<compile_context>
chip_gen: v6e
topology: v6e:2x2x1
jax: 0.10.0
libtpu: 0.0.40
codegen_flags: <defaults>
</compile_context>

<pallas_src>
import functools

import numpy as np
import jax
import jax.numpy as jnp
from jax.experimental import pallas as pl
from jax.experimental.pallas import tpu as pltpu


_LANE = 128   # lane width: feature dims padded to a multiple of this
_SUBLANE = 8  # node axis padded to a multiple of this


def _round_up(x, m):
    return ((x + m - 1) // m) * m


def _pad2d(x, rows, cols):
    r, c = x.shape
    return jnp.pad(x, ((0, rows - r), (0, cols - c)))


def _is_identity(x):
    """Host-side check (wrapper is not jitted): is X the NxN identity?"""
    xh = np.asarray(x)
    return (xh.ndim == 2 and xh.shape[0] == xh.shape[1]
            and np.array_equal(xh, np.eye(xh.shape[0], dtype=xh.dtype)))


def _apply_act(y, activation):
    """In-kernel activations (sigmoid uses the EUP approximate reciprocal)."""
    if activation == "tanh":
        return jnp.tanh(y)
    if activation == "relu":
        return jnp.maximum(y, 0.0)
    if activation == "sigmoid":
        return pl.reciprocal(1.0 + jnp.exp(-y), approx=True)
    return y  # identity


# ---------------------------------------------------------------------------
# FUSED PATH: one pallas_call for the whole forward (small graphs).
# All operands are full-array VMEM blocks; grid = (1,).
# ---------------------------------------------------------------------------
def _make_fused_kernel(activations, skip_first_matmul):
    def kernel(*refs):
        it = iter(refs)
        a_ref = next(it)
        h_ref = next(it)
        layer_refs = []
        for l in range(len(activations)):
            w_ref = None if (l == 0 and skip_first_matmul) else next(it)
            b_ref = next(it)
            layer_refs.append((w_ref, b_ref))
        wc_ref = next(it)
        bc_ref = next(it)
        cls_ref = next(it)
        feat_ref = next(it)

        a = a_ref[...]
        h = h_ref[...]
        for (w_ref, b_ref), act in zip(layer_refs, activations):
            # Reassociated: A_hat @ (H @ W) contracts A_hat against the narrow
            # output width instead of the input width.
            xw = h if w_ref is None else jnp.dot(
                h, w_ref[...], preferred_element_type=jnp.float32)
            h = _apply_act(
                jnp.dot(a, xw, preferred_element_type=jnp.float32) + b_ref[...],
                act)
        feat_ref[...] = h
        logits = jnp.dot(h, wc_ref[...],
                         preferred_element_type=jnp.float32) + bc_ref[...]
        cls_ref[...] = _apply_act(logits, "sigmoid")
    return kernel


def hybrid_model_forward(a_hat, x, feature_layers, clf_w, clf_b):
    """Fused HybridModel.forward (single pallas_call).

    a_hat: (N, N) normalized adjacency; x: (N, F0) node features;
    feature_layers: list of (w, b, activation) with w pre-transposed (f_in, f_out);
    clf_w: (f_last, C) pre-transposed classifier weight; clf_b: (C,).
    Returns (classified, feature_output) as in the PyTorch module.
    """
    n = a_hat.shape[0]
    n_pad = _round_up(n, _SUBLANE)                 # 34 -> 40, NOT 128
    a_pad = _pad2d(a_hat.astype(jnp.float32), n_pad, n_pad)

    skip_first = _is_identity(x)
    activations = tuple(act for (_, _, act) in feature_layers)

    inputs = [a_pad]
    if skip_first:
        w1 = feature_layers[0][0]
        h0 = _pad2d(w1.astype(jnp.float32), n_pad, _round_up(w1.shape[1], _LANE))
    else:
        h0 = _pad2d(x.astype(jnp.float32), n_pad, _round_up(x.shape[1], _LANE))
    inputs.append(h0)

    f_in_pad = h0.shape[1]
    for l, (w, b, _act) in enumerate(feature_layers):
        f_out_pad = _round_up(w.shape[1], _LANE)
        if not (l == 0 and skip_first):
            inputs.append(_pad2d(w.astype(jnp.float32), f_in_pad, f_out_pad))
        inputs.append(_pad2d(b.reshape(1, -1).astype(jnp.float32), 1, f_out_pad))
        f_in_pad = f_out_pad

    c_pad = _round_up(clf_w.shape[1], _LANE)
    inputs.append(_pad2d(clf_w.astype(jnp.float32), f_in_pad, c_pad))
    inputs.append(_pad2d(clf_b.reshape(1, -1).astype(jnp.float32), 1, c_pad))

    kernel = _make_fused_kernel(activations, skip_first)
    out_shape = (jax.ShapeDtypeStruct((n_pad, c_pad), jnp.float32),
                 jax.ShapeDtypeStruct((n_pad, f_in_pad), jnp.float32))
    in_specs = [pl.BlockSpec(arr.shape, lambda i: (0, 0)) for arr in inputs]
    out_specs = (pl.BlockSpec((n_pad, c_pad), lambda i: (0, 0)),
                 pl.BlockSpec((n_pad, f_in_pad), lambda i: (0, 0)))

    classified_pad, features_pad = pl.pallas_call(
        kernel,
        out_shape=out_shape,
        grid=(1,),
        in_specs=in_specs,
        out_specs=out_specs,
        compiler_params=pltpu.CompilerParams(
            dimension_semantics=("arbitrary",)),
    )(*inputs)

    classified = classified_pad[:n, :clf_w.shape[1]]
    features = features_pad[:n, :feature_layers[-1][0].shape[1]]
    return classified, features


# ---------------------------------------------------------------------------
# TILED PATH (large graphs): dense kernel + streaming propagation kernel.
# ---------------------------------------------------------------------------
def _dense_kernel_bias(x_ref, w_ref, b_ref, o_ref, *, activation):
    y = jnp.dot(x_ref[...], w_ref[...], preferred_element_type=jnp.float32)
    o_ref[...] = _apply_act(y + b_ref[...], activation)


def _dense_kernel_nobias(x_ref, w_ref, o_ref, *, activation):
    y = jnp.dot(x_ref[...], w_ref[...], preferred_element_type=jnp.float32)
    o_ref[...] = _apply_act(y, activation)


def dense_forward(x, w, b, activation, *, tm):
    """out = act(x @ w [+ b]).  x: (n_pad, f_in_pad); w: (f_in_pad, f_out_pad)."""
    n_pad, f_in_pad = x.shape
    f_out_pad = w.shape[1]
    need = 2 * 4 * (tm * f_in_pad + f_in_pad * f_out_pad + tm * f_out_pad + f_out_pad)
    vmem_limit = int(min(max(need + (4 << 20), 16 << 20), 96 << 20))

    x_spec = pl.BlockSpec((tm, f_in_pad), lambda i: (i, 0))
    w_spec = pl.BlockSpec((f_in_pad, f_out_pad), lambda i: (0, 0))
    o_spec = pl.BlockSpec((tm, f_out_pad), lambda i: (i, 0))
    if b is None:
        kernel = functools.partial(_dense_kernel_nobias, activation=activation)
        in_specs, args = [x_spec, w_spec], (x, w)
    else:
        kernel = functools.partial(_dense_kernel_bias, activation=activation)
        in_specs = [x_spec, w_spec, pl.BlockSpec((1, f_out_pad), lambda i: (0, 0))]
        args = (x, w, b)

    return pl.pallas_call(
        kernel,
        out_shape=jax.ShapeDtypeStruct((n_pad, f_out_pad), jnp.float32),
        grid=(n_pad // tm,),
        in_specs=in_specs,
        out_specs=o_spec,
        compiler_params=pltpu.CompilerParams(
            dimension_semantics=("parallel",),
            vmem_limit_bytes=vmem_limit),
    )(*args)


def _prop_kernel(a_ref, xw_ref, b_ref, o_ref, *, activation, tk):
    """out = act(A_hat @ XW + b); accumulates directly into the f32 output block."""
    k = pl.program_id(1)
    if xw_ref.shape[0] == tk:            # single contraction step: no dynamic slice
        xw_k = xw_ref[...]
    else:
        start = pl.multiple_of(k * tk, tk)
        xw_k = xw_ref[pl.ds(start, tk), :]
    part = jnp.dot(a_ref[...], xw_k, preferred_element_type=jnp.float32)

    @pl.when(k == 0)
    def _():
        o_ref[...] = part

    @pl.when(k > 0)
    def _():
        o_ref[...] += part

    @pl.when(k == pl.num_programs(1) - 1)
    def _():
        o_ref[...] = _apply_act(o_ref[...] + b_ref[...], activation)


def propagate_forward(a_hat_bf16, xw_bf16, b, activation, *, tm, tk):
    """a_hat: (n_pad, n_pad) bf16; xw: (n_pad, f_out_pad) bf16 (held resident);
    b: (1, f_out_pad) f32.  Returns f32 (n_pad, f_out_pad)."""
    n_pad = a_hat_bf16.shape[0]
    f_out_pad = xw_bf16.shape[1]
    need = (2 * 2 * n_pad * f_out_pad          # resident XW (bf16, double-buffered)
            + 2 * 2 * tm * tk                  # A_hat tiles (bf16)
            + 2 * 4 * tm * f_out_pad           # output tiles (f32)
            + 2 * 4 * f_out_pad)               # bias
    vmem_limit = int(min(max(need + (4 << 20), 16 << 20), 96 << 20))

    kernel = functools.partial(_prop_kernel, activation=activation, tk=tk)
    return pl.pallas_call(
        kernel,
        out_shape=jax.ShapeDtypeStruct((n_pad, f_out_pad), jnp.float32),
        grid=(n_pad // tm, n_pad // tk),
        in_specs=[
            pl.BlockSpec((tm, tk), lambda i, k: (i, k)),
            # XW fully resident: constant block index -> one DMA total.
            pl.BlockSpec((n_pad, f_out_pad), lambda i, k: (0, 0)),
            pl.BlockSpec((1, f_out_pad), lambda i, k: (0, 0)),
        ],
        out_specs=pl.BlockSpec((tm, f_out_pad), lambda i, k: (i, 0)),
        compiler_params=pltpu.CompilerParams(
            dimension_semantics=("parallel", "arbitrary"),
            vmem_limit_bytes=vmem_limit),
    )(a_hat_bf16, xw_bf16, b)


def hybrid_model_forward_tiled(a_hat, x, feature_layers, clf_w, clf_b,
                               *, tm=512, tk=512):
    """Tiled HybridModel.forward for graphs that do not fit a single VMEM block."""
    n = a_hat.shape[0]
    # Row tile: multiple of 8, no larger than the padded node count.
    tm = max(_SUBLANE, min(_round_up(tm, _SUBLANE), _round_up(n, _SUBLANE)))
    n_pad = _round_up(n, tm)
    # Contraction tile must be a multiple of 128 dividing n_pad, else one step.
    if tk % _LANE != 0 or tk > n_pad or n_pad % tk != 0:
        tk = n_pad

    a_bf16 = _pad2d(a_hat.astype(jnp.float32), n_pad, n_pad).astype(jnp.bfloat16)

    skip_first = _is_identity(x)
    if skip_first:
        w1 = feature_layers[0][0]
        h = _pad2d(w1.astype(jnp.float32), n_pad, _round_up(w1.shape[1], _LANE))
    else:
        h = _pad2d(x.astype(jnp.float32), n_pad, _round_up(x.shape[1], _LANE))

    for l, (w, b, act) in enumerate(feature_layers):
        f_in_pad = h.shape[1]
        f_out_pad = _round_up(w.shape[1], _LANE)
        b_pad = _pad2d(b.reshape(1, -1).astype(jnp.float32), 1, f_out_pad)
        if l == 0 and skip_first:
            xw = h                                   # X == I  =>  X @ W1 == W1
        else:
            w_pad = _pad2d(w.astype(jnp.float32), f_in_pad, f_out_pad)
            xw = dense_forward(h, w_pad, None, "identity", tm=tm)
        # bf16 streaming for the HBM-bound propagation; f32 MXU accumulation.
        h = propagate_forward(a_bf16, xw.astype(jnp.bfloat16), b_pad, act,
                              tm=tm, tk=tk)

    features = h[:n, :feature_layers[-1][0].shape[1]]

    c_pad = _round_up(clf_w.shape[1], _LANE)
    wc_pad = _pad2d(clf_w.astype(jnp.float32), h.shape[1], c_pad)
    bc_pad = _pad2d(clf_b.reshape(1, -1).astype(jnp.float32), 1, c_pad)
    classified = dense_forward(h, wc_pad, bc_pad, "sigmoid", tm=tm)
    return classified[:n, :clf_w.shape[1]], features


# ---------------------------------------------------------------------------
# Glue + pure-JAX reference
# ---------------------------------------------------------------------------
def build_a_hat(a):
    """SpektralRule.__init__: D^-1/2 (A + I) D^-1/2 (f32 instead of f64)."""
    a_hat = a + jnp.eye(a.shape[1], dtype=a.dtype)
    deg = jnp.sum(a_hat, axis=0)
    d = jnp.diag(jnp.power(deg, -0.5))
    return d @ a_hat @ d


def reference_forward(a_hat, x, feature_layers, clf_w, clf_b):
    """Pure-JAX reference with the original (A_hat @ X) @ W association."""
    h = x
    for (w, b, act) in feature_layers:
        y = (a_hat @ h) @ w + b
        if act == "tanh":
            h = jnp.tanh(y)
        elif act == "relu":
            h = jnp.maximum(y, 0.0)
        else:
            h = y
    probs = 1.0 / (1.0 + jnp.exp(-(h @ clf_w + clf_b)))
    return probs, h


if __name__ == "__main__":
    key = jax.random.PRNGKey(0)
    k_a, k_w1, k_b1, k_w2, k_b2, k_wc, k_bc = jax.random.split(key, 7)

    # Karate-club-sized problem: 34 nodes, identity features,
    # hidden_layer_config = [(4, 'tanh'), (2, 'tanh')], 2-way classifier.
    N = 34
    HIDDEN = [(4, "tanh"), (2, "tanh")]
    OUT_NODES = 2

    # Deterministic symmetric 0/1 adjacency, no self loops.
    upper = (jax.random.uniform(k_a, (N, N)) < 0.2).astype(jnp.float32)
    upper = jnp.triu(upper, 1)
    A = upper + upper.T
    A_hat = build_a_hat(A).astype(jnp.float32)

    X = jnp.eye(N, dtype=jnp.float32)  # initial_input_size == N

    def make_linear(kw, kb, f_in, f_out):
        # PyTorch weight is (out, in) with xavier_normal_; store transposed (in, out).
        std = float(np.sqrt(2.0 / (f_in + f_out)))
        w = jax.random.normal(kw, (f_in, f_out), dtype=jnp.float32) * std
        bound = 1.0 / float(np.sqrt(f_in))  # default nn.Linear bias init
        b = jax.random.uniform(kb, (f_out,), minval=-bound, maxval=bound,
                               dtype=jnp.float32)
        return w, b

    layers = []
    f_in = N
    for (f_out, act), (kw, kb) in zip(HIDDEN, [(k_w1, k_b1), (k_w2, k_b2)]):
        w, b = make_linear(kw, kb, f_in, f_out)
        layers.append((w, b, act))
        f_in = f_out

    clf_w, clf_b = make_linear(k_wc, k_bc, f_in, OUT_NODES)

    ref_cls, ref_feat = reference_forward(A_hat, X, layers, clf_w, clf_b)

    # --- fused single-pallas_call path (default) ---
    classified, features = hybrid_model_forward(A_hat, X, layers, clf_w, clf_b)
    classified = jax.block_until_ready(classified)
    features = jax.block_until_ready(features)
    assert classified.shape == (N, OUT_NODES)
    assert features.shape == (N, HIDDEN[-1][0])
    np.testing.assert_allclose(np.asarray(features), np.asarray(ref_feat),
                               rtol=1e-4, atol=1e-5)
    # Sigmoid uses the EUP approximate reciprocal -> slightly looser tolerance.
    np.testing.assert_allclose(np.asarray(classified), np.asarray(ref_cls),
                               rtol=5e-3, atol=5e-3)

    # --- tiled / bf16-streaming path (large-graph code path, exercised small) ---
    cls_t, feat_t = hybrid_model_forward_tiled(A_hat, X, layers, clf_w, clf_b,
                                               tm=16)
    cls_t = jax.block_until_ready(cls_t)
    feat_t = jax.block_until_ready(feat_t)
    assert cls_t.shape == (N, OUT_NODES)
    assert feat_t.shape == (N, HIDDEN[-1][0])
    # bf16 A_hat / XW streaming -> loosened tolerances (expected, not a bug).
    np.testing.assert_allclose(np.asarray(feat_t), np.asarray(ref_feat),
                               rtol=5e-2, atol=5e-2)
    np.testing.assert_allclose(np.asarray(cls_t), np.asarray(ref_cls),
                               rtol=5e-2, atol=5e-2)

    print("KERNEL_OK")
</pallas_src>

<mosaic_0001>
module attributes {stable_mosaic.version = 11 : i64} {
  func.func @kernel(%arg0: i32, %arg1: memref<40x40xf32, #tpu.memory_space<vmem>>, %arg2: memref<40x128xf32, #tpu.memory_space<vmem>>, %arg3: memref<1x128xf32, #tpu.memory_space<vmem>>, %arg4: memref<128x128xf32, #tpu.memory_space<vmem>>, %arg5: memref<1x128xf32, #tpu.memory_space<vmem>>, %arg6: memref<128x128xf32, #tpu.memory_space<vmem>>, %arg7: memref<1x128xf32, #tpu.memory_space<vmem>>, %arg8: memref<40x128xf32, #tpu.memory_space<vmem>>, %arg9: memref<40x128xf32, #tpu.memory_space<vmem>>) attributes {dimension_semantics = [#tpu.dimension_semantics<arbitrary>], iteration_bounds = array<i64: 1>, scalar_prefetch = 0 : i64, scratch_operands = 0 : i64, tpu.core_type = #tpu.core_type<tc>, window_params = [{pipeline_mode = #tpu.pipeline_mode<synchronous>, transform_indices = @transform_0, window_bounds = array<i64: 40, 40>}, {pipeline_mode = #tpu.pipeline_mode<synchronous>, transform_indices = @transform_1, window_bounds = array<i64: 40, 128>}, {pipeline_mode = #tpu.pipeline_mode<synchronous>, transform_indices = @transform_2, window_bounds = array<i64: 1, 128>}, {pipeline_mode = #tpu.pipeline_mode<synchronous>, transform_indices = @transform_3, window_bounds = array<i64: 128, 128>}, {pipeline_mode = #tpu.pipeline_mode<synchronous>, transform_indices = @transform_4, window_bounds = array<i64: 1, 128>}, {pipeline_mode = #tpu.pipeline_mode<synchronous>, transform_indices = @transform_5, window_bounds = array<i64: 128, 128>}, {pipeline_mode = #tpu.pipeline_mode<synchronous>, transform_indices = @transform_6, window_bounds = array<i64: 1, 128>}, {pipeline_mode = #tpu.pipeline_mode<synchronous>, transform_indices = @transform_7, window_bounds = array<i64: 40, 128>}, {pipeline_mode = #tpu.pipeline_mode<synchronous>, transform_indices = @transform_8, window_bounds = array<i64: 40, 128>}]} {
    %c0 = arith.constant 0 : index
    %c0_0 = arith.constant 0 : index
    %0 = vector.load %arg1[%c0, %c0_0] : memref<40x40xf32, #tpu.memory_space<vmem>>, vector<40x40xf32>
    %c0_1 = arith.constant 0 : index
    %c0_2 = arith.constant 0 : index
    %1 = vector.load %arg2[%c0_1, %c0_2] : memref<40x128xf32, #tpu.memory_space<vmem>>, vector<40x128xf32>
    %cst = arith.constant dense<0.000000e+00> : vector<40x128xf32>
    %2 = tpu.matmul %0, %1, %cst {dimension_numbers = #tpu.dot_dimension_numbers<[1], [0], [0], [1], [0, 0, 1, 1], [], []>} : vector<40x40xf32>, vector<40x128xf32>, vector<40x128xf32> -> vector<40x128xf32>
    %c0_3 = arith.constant 0 : index
    %c0_4 = arith.constant 0 : index
    %3 = vector.load %arg3[%c0_3, %c0_4] : memref<1x128xf32, #tpu.memory_space<vmem>>, vector<1x128xf32>
    %4 = vector.broadcast %3 : vector<1x128xf32> to vector<40x128xf32>
    %5 = arith.addf %2, %4 : vector<40x128xf32>
    %6 = math.tanh %5 : vector<40x128xf32>
    %c0_5 = arith.constant 0 : index
    %c0_6 = arith.constant 0 : index
    %7 = vector.load %arg4[%c0_5, %c0_6] : memref<128x128xf32, #tpu.memory_space<vmem>>, vector<128x128xf32>
    %cst_7 = arith.constant dense<0.000000e+00> : vector<40x128xf32>
    %8 = tpu.matmul %6, %7, %cst_7 {dimension_numbers = #tpu.dot_dimension_numbers<[1], [0], [0], [1], [0, 0, 1, 1], [], []>} : vector<40x128xf32>, vector<128x128xf32>, vector<40x128xf32> -> vector<40x128xf32>
    %cst_8 = arith.constant dense<0.000000e+00> : vector<40x128xf32>
    %9 = tpu.matmul %0, %8, %cst_8 {dimension_numbers = #tpu.dot_dimension_numbers<[1], [0], [0], [1], [0, 0, 1, 1], [], []>} : vector<40x40xf32>, vector<40x128xf32>, vector<40x128xf32> -> vector<40x128xf32>
    %c0_9 = arith.constant 0 : index
    %c0_10 = arith.constant 0 : index
    %10 = vector.load %arg5[%c0_9, %c0_10] : memref<1x128xf32, #tpu.memory_space<vmem>>, vector<1x128xf32>
    %11 = vector.broadcast %10 : vector<1x128xf32> to vector<40x128xf32>
    %12 = arith.addf %9, %11 : vector<40x128xf32>
    %13 = math.tanh %12 : vector<40x128xf32>
    %c0_11 = arith.constant 0 : index
    %c0_12 = arith.constant 0 : index
    %14 = vector.load %arg9[%c0_11, %c0_12] : memref<40x128xf32, #tpu.memory_space<vmem>>, vector<40x128xf32>
    tpu.vector_store %arg9[%c0_11, %c0_12], %13 {strides = array<i32>} : memref<40x128xf32, #tpu.memory_space<vmem>>, vector<40x128xf32>,
    %c0_13 = arith.constant 0 : index
    %c0_14 = arith.constant 0 : index
    %15 = vector.load %arg6[%c0_13, %c0_14] : memref<128x128xf32, #tpu.memory_space<vmem>>, vector<128x128xf32>
    %cst_15 = arith.constant dense<0.000000e+00> : vector<40x128xf32>
    %16 = tpu.matmul %13, %15, %cst_15 {dimension_numbers = #tpu.dot_dimension_numbers<[1], [0], [0], [1], [0, 0, 1, 1], [], []>} : vector<40x128xf32>, vector<128x128xf32>, vector<40x128xf32> -> vector<40x128xf32>
    %c0_16 = arith.constant 0 : index
    %c0_17 = arith.constant 0 : index
    %17 = vector.load %arg7[%c0_16, %c0_17] : memref<1x128xf32, #tpu.memory_space<vmem>>, vector<1x128xf32>
    %18 = vector.broadcast %17 : vector<1x128xf32> to vector<40x128xf32>
    %19 = arith.addf %16, %18 : vector<40x128xf32>
    %cst_18 = arith.constant 0.000000e+00 : f32
    %20 = vector.broadcast %cst_18 : f32 to vector<40x128xf32>
    %21 = arith.subf %20, %19 : vector<40x128xf32>
    %22 = math.exp %21 : vector<40x128xf32>
    %cst_19 = arith.constant 1.000000e+00 : f32
    %23 = vector.broadcast %cst_19 : f32 to vector<40x128xf32>
    %24 = arith.addf %23, %22 : vector<40x128xf32>
    %25 = tpu.reciprocal %24 {approx = true} : vector<40x128xf32> -> vector<40x128xf32>
    %c0_20 = arith.constant 0 : index
    %c0_21 = arith.constant 0 : index
    %26 = vector.load %arg8[%c0_20, %c0_21] : memref<40x128xf32, #tpu.memory_space<vmem>>, vector<40x128xf32>
    tpu.vector_store %arg8[%c0_20, %c0_21], %25 {strides = array<i32>} : memref<40x128xf32, #tpu.memory_space<vmem>>, vector<40x128xf32>,
    return
  }
  func.func @transform_0(%arg0: i32) -> (i32, i32) {
    %c0_i32 = arith.constant 0 : i32
    %c0_i32_0 = arith.constant 0 : i32
    %c0_i32_1 = arith.constant 0 : i32
    return %c0_i32, %c0_i32_0 : i32, i32
  }
  func.func @transform_1(%arg0: i32) -> (i32, i32) {
    %c0_i32 = arith.constant 0 : i32
    %c0_i32_0 = arith.constant 0 : i32
    %c0_i32_1 = arith.constant 0 : i32
    return %c0_i32, %c0_i32_0 : i32, i32
  }
  func.func @transform_2(%arg0: i32) -> (i32, i32) {
    %c0_i32 = arith.constant 0 : i32
    %c0_i32_0 = arith.constant 0 : i32
    %c0_i32_1 = arith.constant 0 : i32
    return %c0_i32, %c0_i32_0 : i32, i32
  }
  func.func @transform_3(%arg0: i32) -> (i32, i32) {
    %c0_i32 = arith.constant 0 : i32
    %c0_i32_0 = arith.constant 0 : i32
    %c0_i32_1 = arith.constant 0 : i32
    return %c0_i32, %c0_i32_0 : i32, i32
  }
  func.func @transform_4(%arg0: i32) -> (i32, i32) {
    %c0_i32 = arith.constant 0 : i32
    %c0_i32_0 = arith.constant 0 : i32
    %c0_i32_1 = arith.constant 0 : i32
    return %c0_i32, %c0_i32_0 : i32, i32
  }
  func.func @transform_5(%arg0: i32) -> (i32, i32) {
    %c0_i32 = arith.constant 0 : i32
    %c0_i32_0 = arith.constant 0 : i32
    %c0_i32_1 = arith.constant 0 : i32
    return %c0_i32, %c0_i32_0 : i32, i32
  }
  func.func @transform_6(%arg0: i32) -> (i32, i32) {
    %c0_i32 = arith.constant 0 : i32
    %c0_i32_0 = arith.constant 0 : i32
    %c0_i32_1 = arith.constant 0 : i32
    return %c0_i32, %c0_i32_0 : i32, i32
  }
  func.func @transform_7(%arg0: i32) -> (i32, i32) {
    %c0_i32 = arith.constant 0 : i32
    %c0_i32_0 = arith.constant 0 : i32
    %c0_i32_1 = arith.constant 0 : i32
    return %c0_i32, %c0_i32_0 : i32, i32
  }
  func.func @transform_8(%arg0: i32) -> (i32, i32) {
    %c0_i32 = arith.constant 0 : i32
    %c0_i32_0 = arith.constant 0 : i32
    %c0_i32_1 = arith.constant 0 : i32
    return %c0_i32, %c0_i32_0 : i32, i32
  }
}

</mosaic_0001>

<bundles_post_ra>
// kernel: tpu_custom_call.1
= control target key start
LH: loop header
LB: loop body
LE: loop exit
PB: predicated region body
PF: predicated region fallthrough
CT: control target
= control target key end

     0   :  { %14 = vsyncpa [#allocation3], 0  ;;  %s1215_s0 = inlined_call_operand.hbm [shape: f32[40,40], index: 0, kind: input, shape index: {}]   ;;  %s1216_s1 = inlined_call_operand.hbm [shape: f32[40,128], index: 1, kind: input, shape index: {}]   ;;  %s1217_s2 = inlined_call_operand.vmem [shape: f32[1,128], index: 2, kind: input, shape index: {}]   ;;  %s1218_s3 = inlined_call_operand.hbm [shape: f32[128,128], index: 3, kind: input, shape index: {}]   ;;  %s1219_s4 = inlined_call_operand.vmem [shape: f32[1,128], index: 4, kind: input, shape index: {}]   ;;  %s1220_s5 = inlined_call_operand.hbm [shape: f32[128,128], index: 5, kind: input, shape index: {}]   ;;  %s1221_s6 = inlined_call_operand.vmem [shape: f32[1,128], index: 6, kind: input, shape index: {}]   ;;  %s1222_s7 = inlined_call_operand.hbm [shape: f32[40,128], index: 7, kind: output, shape index: {0}]   ;;  %s1223_s8 = inlined_call_operand.hbm [shape: f32[40,128], index: 8, kind: output, shape index: {1}]  }
   0x1   :  { %15 = vsyncpa [#allocation6], 0 }
   0x2   :  { %16 = vsyncpa [#allocation9], 0 }
   0x3   :  { %17 = vsyncpa [#allocation4], 0 }
   0x4   :  { %18 = vsyncpa [#allocation12], 0  ;;  %s1003_s27 = smov [#allocation5]   ;;  %s1004_s29 = smov [#allocation2]  }
   0x5   :  { %s36_s28 = sshll.u32 %s1003_s27, 4  ;;  %s24_s30 = sshll.u32 %s1004_s29, 4  ;;  %s37_s28 = int_to_ptr.vmem [resolvable:$true] %s36_s28  ;;  %s25_s30 = int_to_ptr.vmem [resolvable:$true] %s24_s30 }
   0x6   :  { %s881_s9 = scalar_lea.vmem %s37_s28, 640  ;;  %p886_p1 = scmp.lt.s32.totalorder %s37_s28, %s37_s28 }
   0x7   :  { %p882_p0 = scmp.ne.s32.totalorder %s37_s28, %s881_s9  ;;  %p887_p2 = scmp.lt.s32.totalorder %s881_s9, %s881_s9 }
   0x9   :  { %p888_p3 = por %p887_p2, %p886_p1 }
   0xb   :  { %p889_p4 = pnand %p888_p3, %p882_p0 }
   0xd   :  { %892 = shalt.err (!%p889_p4)
}
   0xe   :  { %s1005_s10 = smov 128   ;;  %s1006_s11 = smov 8  }
   0xf   :  { %42 = dma.hbm_to_vmem [thread:$0]  %s1216_s1, 640, %s37_s28, [#allocation6], %s1005_s10, %s1005_s10, %s1006_s11  }
  0x10   :  { %s901_s14 = scalar_lea.vmem %s25_s30, 640  ;;  %p906_p6 = scmp.lt.s32.totalorder %s25_s30, %s25_s30 }
  0x11   :  { %p902_p5 = scmp.ne.s32.totalorder %s25_s30, %s901_s14  ;;  %p907_p7 = scmp.lt.s32.totalorder %s901_s14, %s901_s14 }
  0x13   :  { %p908_p8 = por %p907_p7, %p906_p6 }
  0x15   :  { %p909_p9 = pnand %p908_p8, %p902_p5 }
  0x17   :  { %912 = shalt.err (!%p909_p9)
}
  0x18   :  { %30 = dma.hbm_to_vmem [thread:$0]  %s1215_s0, 640, %s25_s30, [#allocation3], %s1005_s10, %s1005_s10, %s1006_s11  }
  0x19   :  { %s1007_s17 = smov [#allocation7]   ;;  %s1008_s19 = smov [#allocation8]  }
  0x1a   :  { %s50_s18 = sshll.u32 %s1007_s17, 4  ;;  %s64_s20 = sshll.u32 %s1008_s19, 4  ;;  %s51_s18 = int_to_ptr.vmem [resolvable:$true] %s50_s18  ;;  %s65_s20 = int_to_ptr.vmem [resolvable:$true] %s64_s20 }
  0x1b   :  { %s921_s1 = scalar_lea.vmem %s51_s18, 2048  ;;  %p926_p11 = scmp.lt.s32.totalorder %s51_s18, %s51_s18 }
  0x1c   :  { %p922_p10 = scmp.ne.s32.totalorder %s51_s18, %s921_s1  ;;  %p927_p12 = scmp.lt.s32.totalorder %s921_s1, %s921_s1 }
  0x1e   :  { %p928_p13 = por %p927_p12, %p926_p11 }
  0x20   :  { %p929_p0 = pnand %p928_p13, %p922_p10 }
  0x22   :  { %932 = shalt.err (!%p929_p0)
}
  0x23   :  { %56 = dma.hbm_to_vmem [thread:$0]  %s1218_s3, 2048, %s51_s18, [#allocation6], %s1005_s10, %s1005_s10, %s1006_s11  }
  0x24   :  { %s941_s0 = scalar_lea.vmem %s65_s20, 2048  ;;  %p946_p2 = scmp.lt.s32.totalorder %s65_s20, %s65_s20 }
  0x25   :  { %p942_p1 = scmp.ne.s32.totalorder %s65_s20, %s941_s0  ;;  %p947_p3 = scmp.lt.s32.totalorder %s941_s0, %s941_s0 }
  0x27   :  { %p948_p4 = por %p947_p3, %p946_p2 }
  0x29   :  { %p949_p5 = pnand %p948_p4, %p942_p1 }
  0x2b   :  { %952 = shalt.err (!%p949_p5)
}
  0x2c   :  { %70 = dma.hbm_to_vmem [thread:$0]  %s1220_s5, 2048, %s65_s20, [#allocation9], %s1005_s10, %s1005_s10, %s1006_s11  }
  0x2d   :  { %993 = dma.done.wait [#allocation3], 640  }
  0x2e   :  { %994 = vsyncadd [#allocation3], 4294966656 }
  0x2f   :  { %995 = dma.done.wait [#allocation6], 2688  }
  0x30   :  { %996 = vsyncadd [#allocation6], 4294964608 }
  0x31   :  { %997 = dma.done.wait [#allocation9], 2048  }
  0x32   :  { %998 = vsyncadd [#allocation9], 4294965248  ;;  %v1009_v0 = vmov 0.0   ;;  %vm1010_vm0 = vmmov 0   ;;  %v94_v1 = vld [vmem:[#allocation5 + $0x20] sm:$0xff]  ;;  %v93_v2 = vld [vmem:[#allocation5 + $0x18] sm:$0xff] }
  0x33   :  { %679 = vmatprep.subr.mxu1 %v1009_v0  ;;  %689 = vmatprep.mubr.msk.f32.mxu1 %vm1010_vm0, %v1009_v0  ;;  %v92_v3 = vld [vmem:[#allocation5 + $0x10] sm:$0xff]  ;;  %v91_v4 = vld [vmem:[#allocation5 + $0x8] sm:$0xff]  ;;  %v90_v5 = vld [vmem:[#allocation5] sm:$0xff]  ;;  %vm102_vm1 = vcmask 326656  }
  0x34   :  { %751 = vmatprep.subr.mxu0 %v1009_v0  ;;  %761 = vmatprep.mubr.msk.f32.mxu0 %vm1010_vm0, %v1009_v0  ;;  %v1091_v6 = vld [vmem:[#allocation2] sm:$0xff]  ;;  %v228_v7 = vld [vmem:[#allocation7 + $0x78] sm:$0xff]  ;;  %v226_v10 = vld [vmem:[#allocation7 + $0x68] sm:$0xff] }
  0x35   :  { %680 = vmatpush3.msra.mxu1 %v94_v1  ;;  %v227_v8 = vld [vmem:[#allocation7 + $0x70] sm:$0xff]  ;;  %v1099_v9 = vld [vmem:[#allocation2 + $0x8] sm:$0xff]  ;;  %v225_v11 = vld [vmem:[#allocation7 + $0x60] sm:$0xff] }
  0x36   :  { %681 = vmatprep.subr.mxu1 %v1009_v0  ;;  %v1107_v12 = vld [vmem:[#allocation2 + $0x10] sm:$0xff]  ;;  %v224_v13 = vld [vmem:[#allocation7 + $0x58] sm:$0xff]  ;;  %v223_v14 = vld [vmem:[#allocation7 + $0x50] sm:$0xff] }
  0x37   :  { %682 = vmatpush3.msra.mxu1 %v93_v2  ;;  %v1115_v15 = vld [vmem:[#allocation2 + $0x18] sm:$0xff]  ;;  %v1123_v17 = vld [vmem:[#allocation2 + $0x20] sm:$0xff]  ;;  %v221_v18 = vld [vmem:[#allocation7 + $0x40] sm:$0xff] }
  0x38   :  { %683 = vmatprep.subr.mxu1 %v1009_v0  ;;  %v222_v16 = vld [vmem:[#allocation7 + $0x48] sm:$0xff]  ;;  %v220_v19 = vld [vmem:[#allocation7 + $0x38] sm:$0xff]  ;;  %v219_v20 = vld [vmem:[#allocation7 + $0x30] sm:$0xff] }
  0x39   :  { %684 = vmatpush3.msra.mxu1 %v92_v3  ;;  %v218_v21 = vld [vmem:[#allocation7 + $0x28] sm:$0xff]  ;;  %v217_v22 = vld [vmem:[#allocation7 + $0x20] sm:$0xff]  ;;  %v216_v23 = vld [vmem:[#allocation7 + $0x18] sm:$0xff] }
  0x3a   :  { %685 = vmatprep.subr.mxu1 %v1009_v0  ;;  %v215_v24 = vld [vmem:[#allocation7 + $0x10] sm:$0xff]  ;;  %v214_v25 = vld [vmem:[#allocation7 + $0x8] sm:$0xff]  ;;  %v213_v26 = vld [vmem:[#allocation7] sm:$0xff] }
  0x3b   :  { %686 = vmatpush3.msra.mxu1 %v91_v4  ;;  %v604_v27 = vld [vmem:[%s1217_s2] ss:$0 sm:$0xff]  ;;  %v441_v58 = vld [vmem:[#allocation8 + $0x78] sm:$0xff]  ;;  %v439_v60 = vld [vmem:[#allocation8 + $0x68] sm:$0xff] }
  0x3c   :  { %687 = vmatprep.subr.mxu1 %v1009_v0  ;;  %v440_v59 = vld [vmem:[#allocation8 + $0x70] sm:$0xff]  ;;  %v438_v61 = vld [vmem:[#allocation8 + $0x60] sm:$0xff]  ;;  %v437_v62 = vld [vmem:[#allocation8 + $0x58] sm:$0xff] }
  0x3d   :  { %688 = vmatpush3.msra.mxu1 %v90_v5  ;;  %v436_v63 = vld [vmem:[#allocation8 + $0x50] sm:$0xff]  ;;  %v435_v1 = vld [vmem:[#allocation8 + $0x48] sm:$0xff]  ;;  %v434_v2 = vld [vmem:[#allocation8 + $0x40] sm:$0xff] }
  0x3e   :  { %690 = vmatmul.mubr.msk.f32.vlgmr.msra.gmra.mxu1 %vm102_vm1, %v1091_v6  ;;  %704 = vmatprep.subr.mxu1 %v1009_v0  ;;  %v433_v3 = vld [vmem:[#allocation8 + $0x38] sm:$0xff]  ;;  %v432_v4 = vld [vmem:[#allocation8 + $0x30] sm:$0xff]  ;;  %v431_v5 = vld [vmem:[#allocation8 + $0x28] sm:$0xff] }
  0x3f   :  { %692 = vmatprep.mubr.msk.f32.mxu1 %vm1010_vm0, %v1009_v0  ;;  %705 = vmatpush3.msra.mxu1 %v228_v7  ;;  %v429_v7 = vld [vmem:[#allocation8 + $0x18] sm:$0xff] }
  0x40   :  { %706 = vmatprep.subr.mxu1 %v1009_v0 }
  0x41   :  { %707 = vmatpush3.msra.mxu1 %v227_v8  ;;  %v428_v8 = vld [vmem:[#allocation8 + $0x10] sm:$0xff] }
  0x42   :  { %693 = vmatmul.mubr.msk.f32.gmra.mxu1 %vm102_vm1, %v1099_v9  ;;  %708 = vmatprep.subr.mxu1 %v1009_v0 }
  0x43   :  { %695 = vmatprep.mubr.msk.f32.mxu1 %vm1010_vm0, %v1009_v0  ;;  %709 = vmatpush3.msra.mxu1 %v226_v10  ;;  %v426_v10 = vld [vmem:[#allocation8] sm:$0xff] }
  0x44   :  { %710 = vmatprep.subr.mxu1 %v1009_v0 }
  0x45   :  { %711 = vmatpush3.msra.mxu1 %v225_v11  ;;  %v610_v11 = vld [vmem:[%s1219_s4] ss:$0 sm:$0xff]  ;;  %s1011_s4 = smov [#allocation11]  }
  0x46   :  { %696 = vmatmul.mubr.msk.f32.gmra.mxu1 %vm102_vm1, %v1107_v12  ;;  %712 = vmatprep.subr.mxu1 %v1009_v0  ;;  %s586_s26 = sshll.u32 %s1011_s4, 4  ;;  %s587_s26 = int_to_ptr.vmem [resolvable:$true] %s586_s26 }
  0x47   :  { %698 = vmatprep.mubr.msk.f32.mxu1 %vm1010_vm0, %v1009_v0  ;;  %713 = vmatpush3.msra.mxu1 %v224_v13  ;;  %s953_s27 = scalar_lea.vmem %s587_s26, 640  ;;  %p958_p7 = scmp.lt.s32.totalorder %s587_s26, %s587_s26 }
  0x48   :  { %714 = vmatprep.subr.mxu1 %v1009_v0  ;;  %p954_p6 = scmp.ne.s32.totalorder %s587_s26, %s953_s27  ;;  %p959_p8 = scmp.lt.s32.totalorder %s953_s27, %s953_s27 }
  0x49   :  { %715 = vmatpush3.msra.mxu1 %v223_v14 }
  0x4a   :  { %699 = vmatmul.mubr.msk.f32.gmra.mxu1 %vm102_vm1, %v1115_v15  ;;  %716 = vmatprep.subr.mxu1 %v1009_v0  ;;  %p960_p9 = por %p959_p8, %p958_p7 }
  0x4b   :  { %701 = vmatprep.mubr.msk.f32.mxu1 %vm1010_vm0, %v1009_v0  ;;  %717 = vmatpush3.msra.mxu1 %v222_v16 }
  0x4c   :  { %718 = vmatprep.subr.mxu1 %v1009_v0  ;;  %p961_p10 = pnand %p960_p9, %p954_p6 }
  0x4d   :  { %719 = vmatpush3.msra.mxu1 %v221_v18 }
  0x4e   :  { %702 = vmatmul.mubr.msk.f32.gmra.mxu1 %vm102_vm1, %v1123_v17  ;;  %720 = vmatprep.subr.mxu1 %v1009_v0 }
  0x4f   :  { %736 = vmatprep.mubr.msk.f32.mxu1 %vm1010_vm0, %v1009_v0  ;;  %721 = vmatpush3.msra.mxu1 %v220_v19 }
  0x50   :  { %722 = vmatprep.subr.mxu1 %v1009_v0 }
  0x51   :  { %723 = vmatpush3.msra.mxu1 %v219_v20 }
  0x52   :  { %724 = vmatprep.subr.mxu1 %v1009_v0 }
  0x53   :  { %725 = vmatpush3.msra.mxu1 %v218_v21 }
  0x54   :  { %726 = vmatprep.subr.mxu1 %v1009_v0 }
  0x55   :  { %727 = vmatpush3.msra.mxu1 %v217_v22 }
  0x56   :  { %728 = vmatprep.subr.mxu1 %v1009_v0 }
  0x57   :  { %729 = vmatpush3.msra.mxu1 %v216_v23 }
  0x58   :  { %730 = vmatprep.subr.mxu1 %v1009_v0 }
  0x59   :  { %731 = vmatpush3.msra.mxu1 %v215_v24 }
  0x5a   :  { %732 = vmatprep.subr.mxu1 %v1009_v0 }
  0x5b   :  { %733 = vmatpush3.msra.mxu1 %v214_v25 }
  0x5c   :  { %734 = vmatprep.subr.mxu1 %v1009_v0 }
  0x5d   :  { %735 = vmatpush3.msra.mxu1 %v213_v26 }
  0xfe   :  { %v184_v28 = vpop.f32.mrf.mxu1 }
  0xff   :  { %v185_v29 = vadd.f32 %v604_v27, %v184_v28 }
 0x100   :  { %v691_v30 = vpop.f32.mrf.mxu1 }
 0x101   :  { %833 = vtanh.f32 %v185_v29 }
 0x102   :  { %v189_v31 = vpop.f32.mrf.mxu1 }
 0x103   :  { %v190_v32 = vadd.f32 %v604_v27, %v189_v31 }
 0x104   :  { %v694_v33 = vpop.f32.mrf.mxu1 }
 0x105   :  { %835 = vtanh.f32 %v190_v32 }
 0x106   :  { %v194_v34 = vpop.f32.mrf.mxu1 }
 0x107   :  { %v195_v35 = vadd.f32 %v604_v27, %v194_v34 }
 0x108   :  { %v697_v36 = vpop.f32.mrf.mxu1 }
 0x109   :  { %837 = vtanh.f32 %v195_v35 }
 0x10a   :  { %v199_v37 = vpop.f32.mrf.mxu1 }
 0x10b   :  { %v200_v38 = vadd.f32 %v604_v27, %v199_v37 }
 0x10c   :  { %v700_v39 = vpop.f32.mrf.mxu1 }
 0x10d   :  { %839 = vtanh.f32 %v200_v38 }
 0x10e   :  { %v834_v40 = vpop.eup %833  ;;  %v204_v41 = vpop.f32.mrf.mxu1 }
 0x10f   :  { %v205_v42 = vadd.f32 %v604_v27, %v204_v41  ;;  %737 = vmatmul.mubr.f32.vlgmr.msra.gmra.mxu1 %v834_v40 }
 0x110   :  { %v703_v43 = vpop.f32.mrf.mxu1  ;;  %739 = vmatprep.mubr.msk.f32.mxu1 %vm1010_vm0, %v1009_v0 }
 0x111   :  { %841 = vtanh.f32 %v205_v42 }
 0x112   :  { %v836_v44 = vpop.eup %835 }
 0x113   :  { %740 = vmatmul.mubr.f32.gmra.mxu1 %v836_v44 }
 0x114   :  { %742 = vmatprep.mubr.msk.f32.mxu1 %vm1010_vm0, %v1009_v0 }
 0x116   :  { %v838_v45 = vpop.eup %837 }
 0x117   :  { %743 = vmatmul.mubr.f32.gmra.mxu1 %v838_v45 }
 0x118   :  { %745 = vmatprep.mubr.msk.f32.mxu1 %vm1010_vm0, %v1009_v0 }
 0x11a   :  { %v840_v46 = vpop.eup %839 }
 0x11b   :  { %746 = vmatmul.mubr.f32.gmra.mxu1 %v840_v46 }
 0x11c   :  { %748 = vmatprep.mubr.msk.f32.mxu1 %vm1010_vm0, %v1009_v0 }
 0x11e   :  { %v842_v47 = vpop.eup %841 }
 0x11f   :  { %749 = vmatmul.mubr.f32.gmra.mxu1 %v842_v47 }
 0x1cf   :  { %v295_v48 = vpop.f32.mrf.mxu1 }
 0x1d1   :  { %v738_v49 = vpop.f32.mrf.mxu1 }
 0x1d3   :  { %v300_v50 = vpop.f32.mrf.mxu1 }
 0x1d5   :  { %v741_v51 = vpop.f32.mrf.mxu1 }
 0x1d7   :  { %v305_v52 = vpop.f32.mrf.mxu1 }
 0x1d9   :  { %v744_v53 = vpop.f32.mrf.mxu1 }
 0x1db   :  { %v310_v54 = vpop.f32.mrf.mxu1 }
 0x1dd   :  { %v747_v55 = vpop.f32.mrf.mxu1 }
 0x1df   :  { %v315_v56 = vpop.f32.mrf.mxu1 }
 0x1e0   :  { %752 = vmatpush3.msra.mxu0 %v315_v56 }
 0x1e1   :  { %v750_v57 = vpop.f32.mrf.mxu1  ;;  %753 = vmatprep.subr.mxu0 %v1009_v0 }
 0x1e2   :  { %754 = vmatpush3.msra.mxu0 %v310_v54 }
 0x1e3   :  { %755 = vmatprep.subr.mxu0 %v1009_v0 }
 0x1e4   :  { %756 = vmatpush3.msra.mxu0 %v305_v52 }
 0x1e5   :  { %757 = vmatprep.subr.mxu0 %v1009_v0 }
 0x1e6   :  { %758 = vmatpush3.msra.mxu0 %v300_v50 }
 0x1e7   :  { %759 = vmatprep.subr.mxu0 %v1009_v0 }
 0x1e8   :  { %760 = vmatpush3.msra.mxu0 %v295_v48 }
 0x1e9   :  { %762 = vmatmul.mubr.msk.f32.vlgmr.msra.gmra.mxu0 %vm102_vm1, %v1091_v6  ;;  %776 = vmatprep.subr.mxu0 %v1009_v0  ;;  %v430_v6 = vld [vmem:[#allocation8 + $0x20] sm:$0xff] }
 0x1ea   :  { %764 = vmatprep.mubr.msk.f32.mxu0 %vm1010_vm0, %v1009_v0  ;;  %777 = vmatpush3.msra.mxu0 %v441_v58 }
 0x1eb   :  { %778 = vmatprep.subr.mxu0 %v1009_v0 }
 0x1ec   :  { %779 = vmatpush3.msra.mxu0 %v440_v59 }
 0x1ed   :  { %765 = vmatmul.mubr.msk.f32.gmra.mxu0 %vm102_vm1, %v1099_v9  ;;  %780 = vmatprep.subr.mxu0 %v1009_v0  ;;  %v427_v9 = vld [vmem:[#allocation8 + $0x8] sm:$0xff] }
 0x1ee   :  { %767 = vmatprep.mubr.msk.f32.mxu0 %vm1010_vm0, %v1009_v0  ;;  %781 = vmatpush3.msra.mxu0 %v439_v60 }
 0x1ef   :  { %782 = vmatprep.subr.mxu0 %v1009_v0 }
 0x1f0   :  { %783 = vmatpush3.msra.mxu0 %v438_v61 }
 0x1f1   :  { %768 = vmatmul.mubr.msk.f32.gmra.mxu0 %vm102_vm1, %v1107_v12  ;;  %784 = vmatprep.subr.mxu0 %v1009_v0 }
 0x1f2   :  { %770 = vmatprep.mubr.msk.f32.mxu0 %vm1010_vm0, %v1009_v0  ;;  %785 = vmatpush3.msra.mxu0 %v437_v62 }
 0x1f3   :  { %786 = vmatprep.subr.mxu0 %v1009_v0 }
 0x1f4   :  { %787 = vmatpush3.msra.mxu0 %v436_v63 }
 0x1f5   :  { %771 = vmatmul.mubr.msk.f32.gmra.mxu0 %vm102_vm1, %v1115_v15  ;;  %788 = vmatprep.subr.mxu0 %v1009_v0 }
 0x1f6   :  { %773 = vmatprep.mubr.msk.f32.mxu0 %vm1010_vm0, %v1009_v0  ;;  %789 = vmatpush3.msra.mxu0 %v435_v1 }
 0x1f7   :  { %790 = vmatprep.subr.mxu0 %v1009_v0 }
 0x1f8   :  { %791 = vmatpush3.msra.mxu0 %v434_v2 }
 0x1f9   :  { %774 = vmatmul.mubr.msk.f32.gmra.mxu0 %vm102_vm1, %v1123_v17  ;;  %792 = vmatprep.subr.mxu0 %v1009_v0 }
 0x1fa   :  { %808 = vmatprep.mubr.msk.f32.mxu0 %vm1010_vm0, %v1009_v0  ;;  %793 = vmatpush3.msra.mxu0 %v433_v3 }
 0x1fb   :  { %794 = vmatprep.subr.mxu0 %v1009_v0 }
 0x1fc   :  { %795 = vmatpush3.msra.mxu0 %v432_v4 }
 0x1fd   :  { %796 = vmatprep.subr.mxu0 %v1009_v0 }
 0x1fe   :  { %797 = vmatpush3.msra.mxu0 %v431_v5 }
 0x1ff   :  { %798 = vmatprep.subr.mxu0 %v1009_v0 }
 0x200   :  { %799 = vmatpush3.msra.mxu0 %v430_v6 }
 0x201   :  { %800 = vmatprep.subr.mxu0 %v1009_v0 }
 0x202   :  { %801 = vmatpush3.msra.mxu0 %v429_v7 }
 0x203   :  { %802 = vmatprep.subr.mxu0 %v1009_v0 }
 0x204   :  { %803 = vmatpush3.msra.mxu0 %v428_v8 }
 0x205   :  { %804 = vmatprep.subr.mxu0 %v1009_v0 }
 0x206   :  { %805 = vmatpush3.msra.mxu0 %v427_v9 }
 0x207   :  { %806 = vmatprep.subr.mxu0 %v1009_v0 }
 0x208   :  { %807 = vmatpush3.msra.mxu0 %v426_v10 }
 0x2a9   :  { %v392_v12 = vpop.f32.mrf.mxu0 }
 0x2aa   :  { %v393_v13 = vadd.f32 %v610_v11, %v392_v12 }
 0x2ab   :  { %v763_v14 = vpop.f32.mrf.mxu0 }
 0x2ac   :  { %843 = vtanh.f32 %v393_v13 }
 0x2ad   :  { %v397_v15 = vpop.f32.mrf.mxu0 }
 0x2ae   :  { %v398_v16 = vadd.f32 %v610_v11, %v397_v15 }
 0x2af   :  { %v766_v17 = vpop.f32.mrf.mxu0 }
 0x2b0   :  { %845 = vtanh.f32 %v398_v16 }
 0x2b1   :  { %v402_v18 = vpop.f32.mrf.mxu0 }
 0x2b2   :  { %v403_v19 = vadd.f32 %v610_v11, %v402_v18 }
 0x2b3   :  { %v769_v20 = vpop.f32.mrf.mxu0 }
 0x2b4   :  { %847 = vtanh.f32 %v403_v19 }
 0x2b5   :  { %v407_v21 = vpop.f32.mrf.mxu0 }
 0x2b6   :  { %v408_v22 = vadd.f32 %v610_v11, %v407_v21 }
 0x2b7   :  { %v772_v23 = vpop.f32.mrf.mxu0 }
 0x2b8   :  { %849 = vtanh.f32 %v408_v22 }
 0x2b9   :  { %v844_v24 = vpop.eup %843  ;;  %v412_v25 = vpop.f32.mrf.mxu0 }
 0x2ba   :  { %421 = vst [vmem:[#allocation11] sm:$0xff] %v844_v24  ;;  %v413_v26 = vadd.f32 %v610_v11, %v412_v25  ;;  %809 = vmatmul.mubr.f32.vlgmr.msra.gmra.mxu0 %v844_v24 }
 0x2bb   :  { %v775_v27 = vpop.f32.mrf.mxu0  ;;  %811 = vmatprep.mubr.msk.f32.mxu0 %vm1010_vm0, %v1009_v0 }
 0x2bc   :  { %851 = vtanh.f32 %v413_v26 }
 0x2bd   :  { %v846_v28 = vpop.eup %845 }
 0x2be   :  { %422 = vst [vmem:[#allocation11 + $0x8] sm:$0xff] %v846_v28  ;;  %812 = vmatmul.mubr.f32.gmra.mxu0 %v846_v28 }
 0x2bf   :  { %814 = vmatprep.mubr.msk.f32.mxu0 %vm1010_vm0, %v1009_v0 }
 0x2c1   :  { %v848_v29 = vpop.eup %847 }
 0x2c2   :  { %423 = vst [vmem:[#allocation11 + $0x10] sm:$0xff] %v848_v29  ;;  %815 = vmatmul.mubr.f32.gmra.mxu0 %v848_v29 }
 0x2c3   :  { %817 = vmatprep.mubr.msk.f32.mxu0 %vm1010_vm0, %v1009_v0 }
 0x2c5   :  { %v850_v30 = vpop.eup %849 }
 0x2c6   :  { %424 = vst [vmem:[#allocation11 + $0x18] sm:$0xff] %v850_v30  ;;  %818 = vmatmul.mubr.f32.gmra.mxu0 %v850_v30 }
 0x2c7   :  { %820 = vmatprep.mubr.msk.f32.mxu0 %vm1010_vm0, %v1009_v0 }
 0x2c9   :  { %v852_v31 = vpop.eup %851 }
 0x2ca   :  { %425 = vst [vmem:[#allocation11 + $0x20] sm:$0xff] %v852_v31  ;;  %821 = vmatmul.mubr.f32.gmra.mxu0 %v852_v31 }
 0x2cb   :  { %964 = shalt.err (!%p961_p10)
}
 0x2cc   :  { %592 = dma.vmem_to_hbm [thread:$0]  %s587_s26, 640, %s1223_s8, [#allocation12], %s1005_s10, %s1005_s10, %s1006_s11  }
 0x2cd   :  { %v616_v0 = vld [vmem:[%s1221_s6] ss:$0 sm:$0xff]  ;;  %s1012_s6 = smov [#allocation10]  }
 0x2ce   :  { %s574_s8 = sshll.u32 %s1012_s6, 4  ;;  %s575_s8 = int_to_ptr.vmem [resolvable:$true] %s574_s8 }
 0x2cf   :  { %s973_s12 = scalar_lea.vmem %s575_s8, 640  ;;  %p978_p12 = scmp.lt.s32.totalorder %s575_s8, %s575_s8 }
 0x2d0   :  { %p974_p11 = scmp.ne.s32.totalorder %s575_s8, %s973_s12  ;;  %p979_p13 = scmp.lt.s32.totalorder %s973_s12, %s973_s12 }
 0x2d2   :  { %p980_p0 = por %p979_p13, %p978_p12 }
 0x2d4   :  { %p981_p1 = pnand %p980_p0, %p974_p11 }
 0x37a   :  { %v515_v32 = vpop.f32.mrf.mxu0 }
 0x37b   :  { %v516_v33 = vadd.f32 %v616_v0, %v515_v32 }
 0x37c   :  { %v810_v34 = vpop.f32.mrf.mxu0 }
 0x37d   :  { %v539_v35 = vsub.f32 0.0, %v516_v33 }
 0x37e   :  { %v520_v36 = vpop.f32.mrf.mxu0 }
 0x37f   :  { %v544_v37 = vmul.f32 1.442695, %v539_v35  ;;  %v521_v38 = vadd.f32 %v616_v0, %v520_v36 }
 0x380   :  { %v813_v39 = vpop.f32.mrf.mxu0 }
 0x381   :  { %853 = vpow2.f32 %v544_v37  ;;  %v540_v40 = vsub.f32 0.0, %v521_v38 }
 0x382   :  { %v525_v41 = vpop.f32.mrf.mxu0 }
 0x383   :  { %v546_v42 = vmul.f32 1.442695, %v540_v40  ;;  %v526_v43 = vadd.f32 %v616_v0, %v525_v41 }
 0x384   :  { %v816_v44 = vpop.f32.mrf.mxu0 }
 0x385   :  { %855 = vpow2.f32 %v546_v42  ;;  %v541_v45 = vsub.f32 0.0, %v526_v43 }
 0x386   :  { %v530_v46 = vpop.f32.mrf.mxu0 }
 0x387   :  { %v548_v47 = vmul.f32 1.442695, %v541_v45  ;;  %v531_v48 = vadd.f32 %v616_v0, %v530_v46 }
 0x388   :  { %v819_v49 = vpop.f32.mrf.mxu0 }
 0x389   :  { %857 = vpow2.f32 %v548_v47  ;;  %v542_v50 = vsub.f32 0.0, %v531_v48 }
 0x38a   :  { %v535_v51 = vpop.f32.mrf.mxu0 }
 0x38b   :  { %v550_v52 = vmul.f32 1.442695, %v542_v50  ;;  %v536_v53 = vadd.f32 %v616_v0, %v535_v51 }
 0x38c   :  { %v822_v54 = vpop.f32.mrf.mxu0 }
 0x38d   :  { %859 = vpow2.f32 %v550_v52  ;;  %v543_v55 = vsub.f32 0.0, %v536_v53 }
 0x38e   :  { %v854_v56 = vpop.eup %853 }
 0x38f   :  { %v554_v57 = vadd.f32 1.0, %v854_v56  ;;  %v552_v58 = vmul.f32 1.442695, %v543_v55 }
 0x391   :  { %861 = vrcp.f32 %v554_v57 }
 0x392   :  { %v856_v59 = vpop.eup %855  ;;  %863 = vpow2.f32 %v552_v58 }
 0x393   :  { %v555_v60 = vadd.f32 1.0, %v856_v59 }
 0x395   :  { %865 = vrcp.f32 %v555_v60 }
 0x396   :  { %v858_v61 = vpop.eup %857 }
 0x397   :  { %v556_v62 = vadd.f32 1.0, %v858_v61 }
 0x399   :  { %867 = vrcp.f32 %v556_v62 }
 0x39a   :  { %v860_v63 = vpop.eup %859 }
 0x39b   :  { %v557_v1 = vadd.f32 1.0, %v860_v63 }
 0x39d   :  { %869 = vrcp.f32 %v557_v1 }
 0x39e   :  { %v862_v2 = vpop.eup %861 }
 0x39f   :  { %v864_v3 = vpop.eup %863  ;;  %564 = vst [vmem:[#allocation10] sm:$0xff] %v862_v2 }
 0x3a0   :  { %v558_v4 = vadd.f32 1.0, %v864_v3 }
 0x3a2   :  { %v866_v5 = vpop.eup %865  ;;  %871 = vrcp.f32 %v558_v4 }
 0x3a3   :  { %565 = vst [vmem:[#allocation10 + $0x8] sm:$0xff] %v866_v5 }
 0x3a6   :  { %v868_v6 = vpop.eup %867 }
 0x3a7   :  { %566 = vst [vmem:[#allocation10 + $0x10] sm:$0xff] %v868_v6 }
 0x3aa   :  { %v870_v7 = vpop.eup %869 }
 0x3ab   :  { %567 = vst [vmem:[#allocation10 + $0x18] sm:$0xff] %v870_v7 }
 0x3af   :  { %v872_v8 = vpop.eup %871 }
 0x3b0   :  { %568 = vst [vmem:[#allocation10 + $0x20] sm:$0xff] %v872_v8 }
 0x3b1   :  { %984 = shalt.err (!%p981_p1)
}
 0x3b2   :  { %580 = dma.vmem_to_hbm [thread:$0]  %s575_s8, 640, %s1222_s7, [#allocation4], %s1005_s10, %s1005_s10, %s1006_s11  }
 0x3b3   :  { %999 = dma.done.wait [#allocation4], 640  }
 0x3b4   :  { %1000 = vsyncadd [#allocation4], 4294966656 }
 0x3b5   :  { %1001 = dma.done.wait [#allocation12], 640  }
 0x3b6   :  { %1002 = vsyncadd [#allocation12], 4294966656 }
 0x3b7   :  { %599 = vsyncpa [#allocation3], 1 }
 0x3b8   :  { %600 = vsyncpa [#allocation6], 1 }
 0x3b9   :  { %601 = vsyncpa [#allocation9], 1 }
 0x3ba   :  { %602 = vsyncpa [#allocation4], 1 }
 0x3bb   :  { %603 = vsyncpa [#allocation12], 1 }

</bundles_post_ra>
